<compile_context>
chip_gen: v7x
topology: tpu7x:2x2x1
jax: 0.10.0
libtpu: 0.0.40
codegen_flags: <defaults>
</compile_context>

<pallas_src>
import functools
import math

import jax
import jax.numpy as jnp
from jax import lax
from jax.experimental import pallas as pl
from jax.experimental.pallas import tpu as pltpu


def _layer_norm(v, w_row, b_row, eps):
    mu = jnp.mean(v, axis=-1, keepdims=True)
    var = jnp.mean((v - mu) ** 2, axis=-1, keepdims=True)
    return (v - mu) * lax.rsqrt(var + eps) * w_row + b_row


# --------------------- Kernel A: LN1 + fused QKV projection ------------------

def qkv_kernel(x_ref, ln1w_ref, ln1b_ref, wqkv_ref, bqkv_ref,
               q_ref, k_ref, v_ref, *, num_heads, head_size, eps):
    x = x_ref[0]                                  # (ts, H) f32
    ts = x.shape[0]
    H = num_heads * head_size

    h = _layer_norm(x, ln1w_ref[0], ln1b_ref[0], eps)
    # bf16 operands, f32 accumulation on the MXU.
    qkv = jnp.dot(h.astype(wqkv_ref.dtype), wqkv_ref[...],
                  preferred_element_type=jnp.float32) + bqkv_ref[0]

    def to_heads(part):                           # (ts, H) -> (nh, ts, hd)
        return part.reshape(ts, num_heads, head_size).transpose(1, 0, 2)

    q_ref[0] = to_heads(qkv[:, 0 * H:1 * H]).astype(q_ref.dtype)
    k_ref[0] = to_heads(qkv[:, 1 * H:2 * H]).astype(k_ref.dtype)
    v_ref[0] = to_heads(qkv[:, 2 * H:3 * H]).astype(v_ref.dtype)


# ----- Kernel B: causal attention + out-proj + residual + LN2 + MLP ----------

def attn_mlp_kernel(x_ref, q_ref, k_ref, v_ref,
                    wo_ref, bo_ref, ln2w_ref, ln2b_ref,
                    w1_ref, b1_ref, w2_ref, b2_ref,
                    o_ref, *, eps, activation):
    q = q_ref[0]                                  # (nh, tq, hd) bf16
    k = k_ref[0]                                  # (nh, S,  hd) bf16
    v = v_ref[0]                                  # (nh, S,  hd) bf16
    nh, tq, hd = q.shape
    S = k.shape[1]
    scale = 1.0 / math.sqrt(hd)

    # All heads in one batched MXU contraction; K consumed untransposed.
    scores = lax.dot_general(
        q, k, dimension_numbers=(((2,), (2,)), ((0,), (0,))),
        preferred_element_type=jnp.float32) * scale            # (nh, tq, S)

    # Causal mask from the q-tile offset (only a (tq, S) slab, never (S, S)).
    q_start = pl.program_id(1) * tq
    q_ids = q_start + lax.broadcasted_iota(jnp.int32, (tq, S), 0)
    k_ids = lax.broadcasted_iota(jnp.int32, (tq, S), 1)
    mask = (q_ids >= k_ids)[None, :, :]
    scores = jnp.where(mask, scores, jnp.float32(-10000.0))

    m = jnp.max(scores, axis=-1, keepdims=True)
    e = jnp.exp(scores - m)
    denom = jnp.sum(e, axis=-1, keepdims=True)
    probs = e * pl.reciprocal(denom, approx=True)              # EUP, no divide

    ctx = lax.dot_general(
        probs.astype(v.dtype), v,
        dimension_numbers=(((2,), (1,)), ((0,), (0,))),
        preferred_element_type=jnp.float32)                    # (nh, tq, hd)
    combined = ctx.transpose(1, 0, 2).reshape(tq, nh * hd)     # (tq, H)

    attn_out = jnp.dot(combined.astype(wo_ref.dtype), wo_ref[...],
                       preferred_element_type=jnp.float32) + bo_ref[0]

    x1 = x_ref[0] + attn_out                                   # residual 1

    h2 = _layer_norm(x1, ln2w_ref[0], ln2b_ref[0], eps)
    m1 = jnp.dot(h2.astype(w1_ref.dtype), w1_ref[...],
                 preferred_element_type=jnp.float32) + b1_ref[0]
    if activation == "gelu":
        g = 0.5 * m1 * (1.0 + lax.erf(m1 * (1.0 / math.sqrt(2.0))))
    else:  # relu
        g = jnp.maximum(m1, 0.0)
    m2 = jnp.dot(g.astype(w2_ref.dtype), w2_ref[...],
                 preferred_element_type=jnp.float32) + b2_ref[0]

    o_ref[0] = (x1 + m2).astype(o_ref.dtype)                   # residual 2


# ------------------------------ Wrapper --------------------------------------

def gpt2_block_pallas(x, params, *, num_heads, head_size, eps,
                      activation="gelu", seq_tile=128):
    B, S, H = x.shape
    assert H == num_heads * head_size

    ts = S if S <= seq_tile else seq_tile
    assert S % ts == 0 and (ts == S or ts % 8 == 0)
    n_tiles = S // ts

    # bf16 matmul operands (accumulation stays f32 inside the kernels):
    # hits the bf16 MXU rate on v5e/v6e/v7x and halves weight VMEM/HBM bytes.
    wqkv = params["wqkv"].astype(jnp.bfloat16)
    wo = params["wo"].astype(jnp.bfloat16)
    w1 = params["w1"].astype(jnp.bfloat16)
    w2 = params["w2"].astype(jnp.bfloat16)

    vmem_limit = 48 * 1024 * 1024  # fits v5e/v6e/v7x physical VMEM

    # ---- Pass 1: LN1 + QKV, head-major bf16 q/k/v ----
    qkv_fn = pl.pallas_call(
        functools.partial(qkv_kernel, num_heads=num_heads,
                          head_size=head_size, eps=eps),
        out_shape=(
            jax.ShapeDtypeStruct((B, num_heads, S, head_size), jnp.bfloat16),
            jax.ShapeDtypeStruct((B, num_heads, S, head_size), jnp.bfloat16),
            jax.ShapeDtypeStruct((B, num_heads, S, head_size), jnp.bfloat16),
        ),
        grid_spec=pltpu.PrefetchScalarGridSpec(
            num_scalar_prefetch=0,
            grid=(B, n_tiles),
            in_specs=[
                pl.BlockSpec((1, ts, H), lambda b, si: (b, si, 0)),     # x
                pl.BlockSpec((1, H), lambda b, si: (0, 0)),             # ln1_w
                pl.BlockSpec((1, H), lambda b, si: (0, 0)),             # ln1_b
                pl.BlockSpec((H, 3 * H), lambda b, si: (0, 0)),         # wqkv
                pl.BlockSpec((1, 3 * H), lambda b, si: (0, 0)),         # bqkv
            ],
            out_specs=[
                pl.BlockSpec((1, num_heads, ts, head_size),
                             lambda b, si: (b, 0, si, 0)),
            ] * 3,
        ),
        compiler_params=pltpu.CompilerParams(
            dimension_semantics=("parallel", "parallel"),
            vmem_limit_bytes=vmem_limit,
        ),
    )
    q, k, v = qkv_fn(x, params["ln1_w"], params["ln1_b"], wqkv, params["bqkv"])

    # ---- Pass 2: attention + out-proj + LN2 + MLP + residuals ----
    attn_fn = pl.pallas_call(
        functools.partial(attn_mlp_kernel, eps=eps, activation=activation),
        out_shape=jax.ShapeDtypeStruct((B, S, H), x.dtype),
        grid_spec=pltpu.PrefetchScalarGridSpec(
            num_scalar_prefetch=0,
            grid=(B, n_tiles),
            in_specs=[
                pl.BlockSpec((1, ts, H), lambda b, qi: (b, qi, 0)),      # x
                pl.BlockSpec((1, num_heads, ts, head_size),
                             lambda b, qi: (b, 0, qi, 0)),               # q tile
                pl.BlockSpec((1, num_heads, S, head_size),
                             lambda b, qi: (b, 0, 0, 0)),                # k full
                pl.BlockSpec((1, num_heads, S, head_size),
                             lambda b, qi: (b, 0, 0, 0)),                # v full
                pl.BlockSpec((H, H), lambda b, qi: (0, 0)),              # wo
                pl.BlockSpec((1, H), lambda b, qi: (0, 0)),              # bo
                pl.BlockSpec((1, H), lambda b, qi: (0, 0)),              # ln2_w
                pl.BlockSpec((1, H), lambda b, qi: (0, 0)),              # ln2_b
                pl.BlockSpec((H, 4 * H), lambda b, qi: (0, 0)),          # w1
                pl.BlockSpec((1, 4 * H), lambda b, qi: (0, 0)),          # b1
                pl.BlockSpec((4 * H, H), lambda b, qi: (0, 0)),          # w2
                pl.BlockSpec((1, H), lambda b, qi: (0, 0)),              # b2
            ],
            out_specs=pl.BlockSpec((1, ts, H), lambda b, qi: (b, qi, 0)),
        ),
        compiler_params=pltpu.CompilerParams(
            dimension_semantics=("parallel", "parallel"),
            vmem_limit_bytes=vmem_limit,
        ),
    )
    return attn_fn(x, q, k, v,
                   wo, params["bo"], params["ln2_w"], params["ln2_b"],
                   w1, params["b1"], w2, params["b2"])


# --------------------------- Pure-JAX reference ------------------------------

def gpt2_block_ref(x, params, *, num_heads, head_size, eps):
    """Pure-JAX f32 reference (same math as the PyTorch module, eval mode)."""
    def ln(v, w, b):
        mu = jnp.mean(v, axis=-1, keepdims=True)
        var = jnp.mean((v - mu) ** 2, axis=-1, keepdims=True)
        return (v - mu) / jnp.sqrt(var + eps) * w + b

    B, S, H = x.shape
    h = ln(x, params["ln1_w"][0], params["ln1_b"][0])
    qkv = h @ params["wqkv"] + params["bqkv"][0]
    q, k, v = jnp.split(qkv, 3, axis=-1)
    q = q.reshape(B, S, num_heads, head_size).transpose(0, 2, 1, 3)
    k = k.reshape(B, S, num_heads, head_size).transpose(0, 2, 1, 3)
    v = v.reshape(B, S, num_heads, head_size).transpose(0, 2, 1, 3)
    scores = jnp.einsum("bhqd,bhkd->bhqk", q, k) / math.sqrt(head_size)
    mask = jnp.arange(S)[:, None] >= jnp.arange(S)[None, :]
    scores = jnp.where(mask, scores, -10000.0)
    probs = jax.nn.softmax(scores, axis=-1)
    comb = jnp.einsum("bhqk,bhkd->bhqd", probs, v)
    comb = comb.transpose(0, 2, 1, 3).reshape(B, S, H)
    attn_out = comb @ params["wo"] + params["bo"][0]
    x1 = x + attn_out
    h2 = ln(x1, params["ln2_w"][0], params["ln2_b"][0])
    m1 = h2 @ params["w1"] + params["b1"][0]
    g = 0.5 * m1 * (1.0 + lax.erf(m1 / math.sqrt(2.0)))
    m2 = g @ params["w2"] + params["b2"][0]
    return x1 + m2


if __name__ == "__main__":
    B, S, H = 2, 8, 32
    num_heads = 4
    head_size = H // num_heads
    eps = 1e-5

    key = jax.random.PRNGKey(0)
    keys = jax.random.split(key, 13)

    # Linear weights stored pre-transposed to (in, out) so kernels do y = x@W+b.
    params = {
        "ln1_w": 1.0 + 0.1 * jax.random.normal(keys[0], (1, H), jnp.float32),
        "ln1_b": 0.05 * jax.random.normal(keys[1], (1, H), jnp.float32),
        "wqkv": 0.02 * jax.random.normal(keys[2], (H, 3 * H), jnp.float32),
        "bqkv": 0.01 * jax.random.normal(keys[3], (1, 3 * H), jnp.float32),
        "wo": 0.02 * jax.random.normal(keys[4], (H, H), jnp.float32),
        "bo": 0.01 * jax.random.normal(keys[5], (1, H), jnp.float32),
        "ln2_w": 1.0 + 0.1 * jax.random.normal(keys[6], (1, H), jnp.float32),
        "ln2_b": 0.05 * jax.random.normal(keys[7], (1, H), jnp.float32),
        "w1": 0.02 * jax.random.normal(keys[8], (H, 4 * H), jnp.float32),
        "b1": 0.01 * jax.random.normal(keys[9], (1, 4 * H), jnp.float32),
        "w2": 0.02 * jax.random.normal(keys[10], (4 * H, H), jnp.float32),
        "b2": 0.01 * jax.random.normal(keys[11], (1, H), jnp.float32),
    }
    x = jax.random.normal(keys[12], (B, S, H), jnp.float32)

    out = gpt2_block_pallas(x, params, num_heads=num_heads,
                            head_size=head_size, eps=eps)
    out = jax.block_until_ready(out)

    ref = gpt2_block_ref(x, params, num_heads=num_heads,
                         head_size=head_size, eps=eps)
    assert out.shape == (B, S, H)
    # bf16 matmul operands (f32 accumulation) -> loosened tolerance vs f32 ref.
    max_err = jnp.max(jnp.abs(out - ref))
    assert jnp.allclose(out, ref, rtol=2e-2, atol=2e-2), f"max abs err {max_err}"

    print("KERNEL_OK")
</pallas_src>

<mosaic_0001>
module attributes {stable_mosaic.version = 11 : i64} {
  func.func @qkv_kernel(%arg0: i32, %arg1: i32, %arg2: memref<1x8x32xf32, #tpu.memory_space<vmem>>, %arg3: memref<1x32xf32, #tpu.memory_space<vmem>>, %arg4: memref<1x32xf32, #tpu.memory_space<vmem>>, %arg5: memref<32x96xbf16, #tpu.memory_space<vmem>>, %arg6: memref<1x96xf32, #tpu.memory_space<vmem>>, %arg7: memref<1x4x8x8xbf16, #tpu.memory_space<vmem>>, %arg8: memref<1x4x8x8xbf16, #tpu.memory_space<vmem>>, %arg9: memref<1x4x8x8xbf16, #tpu.memory_space<vmem>>) attributes {dimension_semantics = [#tpu.dimension_semantics<parallel>, #tpu.dimension_semantics<parallel>], iteration_bounds = array<i64: 2, 1>, scalar_prefetch = 0 : i64, scratch_operands = 0 : i64, tpu.core_type = #tpu.core_type<tc>, window_params = [{transform_indices = @transform_0, window_bounds = array<i64: 1, 8, 32>}, {pipeline_mode = #tpu.pipeline_mode<synchronous>, transform_indices = @transform_1, window_bounds = array<i64: 1, 32>}, {pipeline_mode = #tpu.pipeline_mode<synchronous>, transform_indices = @transform_2, window_bounds = array<i64: 1, 32>}, {pipeline_mode = #tpu.pipeline_mode<synchronous>, transform_indices = @transform_3, window_bounds = array<i64: 32, 96>}, {pipeline_mode = #tpu.pipeline_mode<synchronous>, transform_indices = @transform_4, window_bounds = array<i64: 1, 96>}, {transform_indices = @transform_5, window_bounds = array<i64: 1, 4, 8, 8>}, {transform_indices = @transform_6, window_bounds = array<i64: 1, 4, 8, 8>}, {transform_indices = @transform_7, window_bounds = array<i64: 1, 4, 8, 8>}]} {
    %c0 = arith.constant 0 : index
    %c0_0 = arith.constant 0 : index
    %c0_1 = arith.constant 0 : index
    %0 = vector.load %arg2[%c0, %c0_0, %c0_1] : memref<1x8x32xf32, #tpu.memory_space<vmem>>, vector<1x8x32xf32>
    %1 = vector.shape_cast %0 : vector<1x8x32xf32> to vector<8x32xf32>
    %c0_2 = arith.constant 0 : index
    %c0_3 = arith.constant 0 : index
    %2 = vector.load %arg3[%c0_2, %c0_3] : memref<1x32xf32, #tpu.memory_space<vmem>>, vector<1x32xf32>
    %3 = vector.shape_cast %2 : vector<1x32xf32> to vector<32xf32>
    %c0_4 = arith.constant 0 : index
    %c0_5 = arith.constant 0 : index
    %4 = vector.load %arg4[%c0_4, %c0_5] : memref<1x32xf32, #tpu.memory_space<vmem>>, vector<1x32xf32>
    %5 = vector.shape_cast %4 : vector<1x32xf32> to vector<32xf32>
    %cst = arith.constant dense<0.000000e+00> : vector<8xf32>
    %6 = vector.multi_reduction <add>, %1, %cst [1] : vector<8x32xf32> to vector<8xf32>
    %7 = vector.shape_cast %6 : vector<8xf32> to vector<8x1xf32>
    %cst_6 = arith.constant 3.200000e+01 : f32
    %8 = vector.broadcast %cst_6 : f32 to vector<8x1xf32>
    %9 = arith.divf %7, %8 : vector<8x1xf32>
    %10 = vector.broadcast %9 : vector<8x1xf32> to vector<8x32xf32>
    %11 = arith.subf %1, %10 : vector<8x32xf32>
    %12 = arith.mulf %11, %11 : vector<8x32xf32>
    %cst_7 = arith.constant dense<0.000000e+00> : vector<8xf32>
    %13 = vector.multi_reduction <add>, %12, %cst_7 [1] : vector<8x32xf32> to vector<8xf32>
    %14 = vector.shape_cast %13 : vector<8xf32> to vector<8x1xf32>
    %cst_8 = arith.constant 3.200000e+01 : f32
    %15 = vector.broadcast %cst_8 : f32 to vector<8x1xf32>
    %16 = arith.divf %14, %15 : vector<8x1xf32>
    %17 = vector.broadcast %9 : vector<8x1xf32> to vector<8x32xf32>
    %18 = arith.subf %1, %17 : vector<8x32xf32>
    %cst_9 = arith.constant 9.99999974E-6 : f32
    %19 = vector.broadcast %cst_9 : f32 to vector<8x1xf32>
    %20 = arith.addf %16, %19 : vector<8x1xf32>
    %21 = math.rsqrt %20 : vector<8x1xf32>
    %22 = vector.broadcast %21 : vector<8x1xf32> to vector<8x32xf32>
    %23 = arith.mulf %18, %22 : vector<8x32xf32>
    %24 = vector.shape_cast %3 : vector<32xf32> to vector<1x32xf32>
    %25 = vector.broadcast %24 : vector<1x32xf32> to vector<8x32xf32>
    %26 = arith.mulf %23, %25 : vector<8x32xf32>
    %27 = vector.shape_cast %5 : vector<32xf32> to vector<1x32xf32>
    %28 = vector.broadcast %27 : vector<1x32xf32> to vector<8x32xf32>
    %29 = arith.addf %26, %28 : vector<8x32xf32>
    %30 = arith.truncf %29 : vector<8x32xf32> to vector<8x32xbf16>
    %c0_10 = arith.constant 0 : index
    %c0_11 = arith.constant 0 : index
    %31 = vector.load %arg5[%c0_10, %c0_11] : memref<32x96xbf16, #tpu.memory_space<vmem>>, vector<32x96xbf16>
    %cst_12 = arith.constant dense<0.000000e+00> : vector<8x96xf32>
    %32 = tpu.matmul %30, %31, %cst_12 {dimension_numbers = #tpu.dot_dimension_numbers<[1], [0], [0], [1], [0, 0, 1, 1], [], []>} : vector<8x32xbf16>, vector<32x96xbf16>, vector<8x96xf32> -> vector<8x96xf32>
    %c0_13 = arith.constant 0 : index
    %c0_14 = arith.constant 0 : index
    %33 = vector.load %arg6[%c0_13, %c0_14] : memref<1x96xf32, #tpu.memory_space<vmem>>, vector<1x96xf32>
    %34 = vector.shape_cast %33 : vector<1x96xf32> to vector<96xf32>
    %35 = vector.shape_cast %34 : vector<96xf32> to vector<1x96xf32>
    %36 = vector.broadcast %35 : vector<1x96xf32> to vector<8x96xf32>
    %37 = arith.addf %32, %36 : vector<8x96xf32>
    %38 = vector.extract_strided_slice %37 {offsets = [0, 0], sizes = [8, 32], strides = [1, 1]} : vector<8x96xf32> to vector<8x32xf32>
    %39 = vector.shape_cast %38 : vector<8x32xf32> to vector<8x4x8xf32>
    %40 = tpu.transpose %39, [1, 0, 2] : vector<8x4x8xf32> -> vector<4x8x8xf32>
    %41 = arith.truncf %40 : vector<4x8x8xf32> to vector<4x8x8xbf16>
    %c0_15 = arith.constant 0 : index
    %c0_16 = arith.constant 0 : index
    %c0_17 = arith.constant 0 : index
    %c0_18 = arith.constant 0 : index
    %42 = vector.load %arg7[%c0_15, %c0_16, %c0_17, %c0_18] : memref<1x4x8x8xbf16, #tpu.memory_space<vmem>>, vector<1x4x8x8xbf16>
    %43 = vector.shape_cast %42 : vector<1x4x8x8xbf16> to vector<4x8x8xbf16>
    %44 = vector.shape_cast %41 : vector<4x8x8xbf16> to vector<1x4x8x8xbf16>
    tpu.vector_store %arg7[%c0_15, %c0_16, %c0_17, %c0_18], %44 {strides = array<i32>} : memref<1x4x8x8xbf16, #tpu.memory_space<vmem>>, vector<1x4x8x8xbf16>,
    %45 = vector.extract_strided_slice %37 {offsets = [0, 32], sizes = [8, 32], strides = [1, 1]} : vector<8x96xf32> to vector<8x32xf32>
    %46 = vector.shape_cast %45 : vector<8x32xf32> to vector<8x4x8xf32>
    %47 = tpu.transpose %46, [1, 0, 2] : vector<8x4x8xf32> -> vector<4x8x8xf32>
    %48 = arith.truncf %47 : vector<4x8x8xf32> to vector<4x8x8xbf16>
    %c0_19 = arith.constant 0 : index
    %c0_20 = arith.constant 0 : index
    %c0_21 = arith.constant 0 : index
    %c0_22 = arith.constant 0 : index
    %49 = vector.load %arg8[%c0_19, %c0_20, %c0_21, %c0_22] : memref<1x4x8x8xbf16, #tpu.memory_space<vmem>>, vector<1x4x8x8xbf16>
    %50 = vector.shape_cast %49 : vector<1x4x8x8xbf16> to vector<4x8x8xbf16>
    %51 = vector.shape_cast %48 : vector<4x8x8xbf16> to vector<1x4x8x8xbf16>
    tpu.vector_store %arg8[%c0_19, %c0_20, %c0_21, %c0_22], %51 {strides = array<i32>} : memref<1x4x8x8xbf16, #tpu.memory_space<vmem>>, vector<1x4x8x8xbf16>,
    %52 = vector.extract_strided_slice %37 {offsets = [0, 64], sizes = [8, 32], strides = [1, 1]} : vector<8x96xf32> to vector<8x32xf32>
    %53 = vector.shape_cast %52 : vector<8x32xf32> to vector<8x4x8xf32>
    %54 = tpu.transpose %53, [1, 0, 2] : vector<8x4x8xf32> -> vector<4x8x8xf32>
    %55 = arith.truncf %54 : vector<4x8x8xf32> to vector<4x8x8xbf16>
    %c0_23 = arith.constant 0 : index
    %c0_24 = arith.constant 0 : index
    %c0_25 = arith.constant 0 : index
    %c0_26 = arith.constant 0 : index
    %56 = vector.load %arg9[%c0_23, %c0_24, %c0_25, %c0_26] : memref<1x4x8x8xbf16, #tpu.memory_space<vmem>>, vector<1x4x8x8xbf16>
    %57 = vector.shape_cast %56 : vector<1x4x8x8xbf16> to vector<4x8x8xbf16>
    %58 = vector.shape_cast %55 : vector<4x8x8xbf16> to vector<1x4x8x8xbf16>
    tpu.vector_store %arg9[%c0_23, %c0_24, %c0_25, %c0_26], %58 {strides = array<i32>} : memref<1x4x8x8xbf16, #tpu.memory_space<vmem>>, vector<1x4x8x8xbf16>,
    return
  }
  func.func @transform_0(%arg0: i32, %arg1: i32) -> (i32, i32, i32) {
    %c0_i32 = arith.constant 0 : i32
    %c0_i32_0 = arith.constant 0 : i32
    return %arg0, %arg1, %c0_i32 : i32, i32, i32
  }
  func.func @transform_1(%arg0: i32, %arg1: i32) -> (i32, i32) {
    %c0_i32 = arith.constant 0 : i32
    %c0_i32_0 = arith.constant 0 : i32
    %c0_i32_1 = arith.constant 0 : i32
    return %c0_i32, %c0_i32_0 : i32, i32
  }
  func.func @transform_2(%arg0: i32, %arg1: i32) -> (i32, i32) {
    %c0_i32 = arith.constant 0 : i32
    %c0_i32_0 = arith.constant 0 : i32
    %c0_i32_1 = arith.constant 0 : i32
    return %c0_i32, %c0_i32_0 : i32, i32
  }
  func.func @transform_3(%arg0: i32, %arg1: i32) -> (i32, i32) {
    %c0_i32 = arith.constant 0 : i32
    %c0_i32_0 = arith.constant 0 : i32
    %c0_i32_1 = arith.constant 0 : i32
    return %c0_i32, %c0_i32_0 : i32, i32
  }
  func.func @transform_4(%arg0: i32, %arg1: i32) -> (i32, i32) {
    %c0_i32 = arith.constant 0 : i32
    %c0_i32_0 = arith.constant 0 : i32
    %c0_i32_1 = arith.constant 0 : i32
    return %c0_i32, %c0_i32_0 : i32, i32
  }
  func.func @transform_5(%arg0: i32, %arg1: i32) -> (i32, i32, i32, i32) {
    %c0_i32 = arith.constant 0 : i32
    %c0_i32_0 = arith.constant 0 : i32
    %c0_i32_1 = arith.constant 0 : i32
    return %arg0, %c0_i32, %arg1, %c0_i32_0 : i32, i32, i32, i32
  }
  func.func @transform_6(%arg0: i32, %arg1: i32) -> (i32, i32, i32, i32) {
    %c0_i32 = arith.constant 0 : i32
    %c0_i32_0 = arith.constant 0 : i32
    %c0_i32_1 = arith.constant 0 : i32
    return %arg0, %c0_i32, %arg1, %c0_i32_0 : i32, i32, i32, i32
  }
  func.func @transform_7(%arg0: i32, %arg1: i32) -> (i32, i32, i32, i32) {
    %c0_i32 = arith.constant 0 : i32
    %c0_i32_0 = arith.constant 0 : i32
    %c0_i32_1 = arith.constant 0 : i32
    return %arg0, %c0_i32, %arg1, %c0_i32_0 : i32, i32, i32, i32
  }
}

</mosaic_0001>

<bundles_post_ra>
// kernel: tpu_custom_call.1
= control target key start
LH: loop header
LB: loop body
LE: loop exit
PB: predicated region body
PF: predicated region fallthrough
CT: control target
= control target key end

     0   :  { %s1928_s0 = inlined_call_operand.hbm [shape: f32[2,8,32], index: 0, kind: input, shape index: {}]   ;;  %s1929_s1 = inlined_call_operand.vmem [shape: f32[1,32], index: 1, kind: input, shape index: {}]   ;;  %s1930_s2 = inlined_call_operand.vmem [shape: f32[1,32], index: 2, kind: input, shape index: {}]   ;;  %s1931_s3 = inlined_call_operand.hbm [shape: bf16[32,96], index: 3, kind: input, shape index: {}]   ;;  %s1932_s4 = inlined_call_operand.vmem [shape: f32[1,96], index: 4, kind: input, shape index: {}]   ;;  %s1933_s5 = inlined_call_operand.hbm [shape: bf16[2,4,8,8], index: 5, kind: output, shape index: {0}]   ;;  %s1934_s6 = inlined_call_operand.hbm [shape: bf16[2,4,8,8], index: 6, kind: output, shape index: {1}]   ;;  %s1935_s7 = inlined_call_operand.hbm [shape: bf16[2,4,8,8], index: 7, kind: output, shape index: {2}]  }
   0x1   :  { %1941 = sst [smem:[#allocation16_spill]] %s1931_s3 }
   0x2   :  { %13 = vsyncpa [#allocation3], 0 }
   0x3   :  { %15 = vsyncpa [#allocation3 + $0x1], 0 }
   0x4   :  { %16 = vsyncpa [#allocation6], 0 }
   0x5   :  { %17 = vsyncpa [#allocation4], 0 }
   0x6   :  { %19 = vsyncpa [#allocation4 + $0x1], 0 }
   0x7   :  { %20 = vsyncpa [#allocation9], 0 }
   0x8   :  { %22 = vsyncpa [#allocation9 + $0x1], 0  ;;  %s1545_s24 = smov 0   ;;  %s1547_s25 = smov 0  }
   0x9   :  { %s1549_s26 = smov 0   ;;  %s1551_s27 = smov 0  }
   0xa   :  { %s1553_s28 = smov 0   ;;  %s1555_s29 = smov 0  }
   0xb LB: > { %s1576_s30 = sadd.s32 4294967295, %s1486_s29   ;;  %s1939_s8 = sadd.s32 4294967294, %s1486_s29   ;;  %s1486_s29 = sphi %s1555_s29, %s28_s29   ;;  %s1482_s28 = sphi %s1553_s28, %s1964_s28   ;;  %s1478_s27 = sphi %s1551_s27, %s1963_s27   ;;  %s1474_s26 = sphi %s1549_s26, %s1962_s26   ;;  %s1470_s25 = sphi %s1547_s25, %s1961_s25   ;;  %s1466_s24 = sphi %s1545_s24, %s1960_s24  }
   0xc   : > { %p62_p0 = scmp.ne.s32.totalorder %s1470_s25, %s1466_s24  ;;  %p1936_p1 = scmp.eq.s32.totalorder %s1576_s30, 0 }
   0xd   : > { %p178_p3 = scmp.eq.s32.totalorder %s1939_s8, 1  ;;  %p1135_p5 = scmp.ge.s32.totalorder %s1486_s29, 1 }
   0xe   : > { %p1587_p4 = por %p1936_p1, %p62_p0  ;;  %p241_p7 = scmp.lt.s32.totalorder %s1486_s29, 3 }
   0xf   : > { %p1592_p6 = por %p178_p3, %p62_p0  ;;  %s1488_s12 = smov [#allocation5]  }
  0x10   : > { %s1942_s9 = scalar_select %p1587_p4, 1, 0 }
  0x11   : > { %s1943_s10 = scalar_select %p1592_p6, 1, 0 }
  0x12   : > { %p1597_p8 = pnand %p1135_p5, %p241_p7  ;;  %s259_s13 = sshll.u32 %s1488_s12, 4  ;;  %s260_s13 = int_to_ptr.vmem [resolvable:$true] %s259_s13 }
  0x13   : > { %s40_s15 = sadd.s32 1, %s1482_s28  ;;  %s1946_s3 = sld [smem:[#allocation16_spill]] }
  0x14   : > { %s1944_s11 = scalar_select %p1597_p8, 1, 0 }
  0x15   : > { %p1195_p9 = pneg %p1597_p8 }
  0x17   : > { %p1606_p11 = pnand %p1195_p9, %p1936_p1 }
  0x19   : > { %s1282_s18 = scalar_lea.hbm %s1946_s3, 256  ;;  %p1284_p13 = pneg %p1606_p11 }
  0x1a   : > { %p1283_p12 = scmp.ne.s32.totalorder %s1946_s3, %s1282_s18  ;;  %p1289_p5 = scmp.lt.u32.totalorder %s1282_s18, %s1946_s3 }
  0x1c   : > { %p1285_p0 = pnand %p1284_p13, %p1283_p12 }
  0x1e   : > { %p1286_p3 = pneg %p1285_p0 }
  0x20   : > { %p1291_p7 = pnand %p1289_p5, %p1286_p3 }
  0x22   : > { %1294 = shalt.err (!%p1291_p7)
}
  0x23   : > { %s1295_s23 = scalar_lea.vmem %s260_s13, 256  ;;  %p1303_p2 = scmp.lt.s32.totalorder %s260_s13, %s260_s13 }
  0x24   : > { %p1296_p9 = scmp.ne.s32.totalorder %s260_s13, %s1295_s23  ;;  %p1304_p6 = scmp.lt.s32.totalorder %s1295_s23, %s1295_s23 }
  0x26   : > { %p1298_p10 = pnand %p1296_p9, %p1284_p13  ;;  %p1305_p4 = por %p1304_p6, %p1303_p2 }
  0x28   : > { %p1299_p1 = pneg %p1298_p10 }
  0x2a   : > { %p1306_p8 = pnand %p1305_p4, %p1299_p1 }
  0x2c   : > { %1309 = shalt.err (!%p1306_p8)
}
  0x2d   : > { %s1489_s12 = smov 64   ;;  %s1490_s16 = smov 4  }
  0x2e   : > { %1198 = dma.hbm_to_vmem [thread:$0]  (!%p1606_p11), %s1946_s3, 256, %s260_s13, [#allocation6], %s1489_s12, %s1489_s12, %s1490_s16  }
  0x2f   : > { %p42_p1 = scmp.ge.s32.totalorder %s40_s15, 2  ;;  %s49_s19 = sadd.s32 1, %s1474_s26 }
  0x30   : > { %p56_p2 = scmp.ne.s32.totalorder %s1474_s26, %s1470_s25  ;;  %p57_p4 = scmp.eq.s32.totalorder %s1486_s29, 0 }
  0x31   : > { %s1966_s15 = smov (%p42_p1, %s40_s15), 0  ;;  %p1949_p8 = scmp.eq.s32.totalorder %s1576_s30, 1 }
  0x32   : > { %1947 = sst [smem:[#allocation15_spill]] %s1966_s15  ;;  %p1633_p6 = por %p57_p4, %p56_p2 }
  0x33   : > { %p1639_p10 = por %p1949_p8, %p56_p2  ;;  %s44_s14 = ssub.s32 %s1482_s28, %s1966_s15 }
  0x34   : > { %p1214_p12 = scmp.lt.s32.totalorder %s1486_s29, 2  ;;  %p47_p11 = scmp.eq.s32.totalorder %s44_s14, 0 }
  0x35   : > { %s276_s13 = sand.u32 1, %s1474_s26   ;;  %s1139_s12 = sshll.u32 %s1482_s28, 7 }
  0x36   : > { %s1138_s22 = sshll.u32 %s276_s13, 3  ;;  %s1654_s18 = scalar_lea.hbm %s1928_s0, %s1139_s12 }
  0x37   : > { %s1648_s23 = scalar_select %p47_p11, %s1474_s26, %s49_s19  }
  0x38   : > { %s280_s8 = scalar_lea.vmem [#allocation2], %s1138_s22  ;;  %p1660_p13 = pnand %p1214_p12, %p1633_p6 }
  0x39   : > { %s288_s3 = sshll.u32 %s280_s8, 4  ;;  %s277_s19 = scalar_lea.sflag [#allocation3], %s276_s13  ;;  %s1656_s3 = int_to_ptr.vmem [resolvable:$true] %s288_s3 }
  0x3a   : > { %s1310_s15 = scalar_lea.hbm %s1654_s18, 128  ;;  %p1312_p3 = pneg %p1660_p13 }
  0x3b   : > { %p1311_p0 = scmp.ne.s32.totalorder %s1654_s18, %s1310_s15  ;;  %s1315_s12 = scalar_lea.hbm %s1928_s0, 256 }
  0x3c   : > { %p1316_p9 = scmp.lt.u32.totalorder %s1654_s18, %s1928_s0  ;;  %p1317_p1 = scmp.lt.u32.totalorder %s1315_s12, %s1310_s15 }
  0x3d   : > { %p1313_p5 = pnand %p1312_p3, %p1311_p0  ;;  %p1319_p4 = scmp.lt.u32.totalorder %s1310_s15, %s1654_s18 }
  0x3e   : > { %p1318_p2 = por %p1317_p1, %p1316_p9 }
  0x3f   : > { %p1314_p7 = pneg %p1313_p5 }
  0x40   : > { %p1320_p6 = por %p1319_p4, %p1318_p2 }
  0x42   : > { %p1321_p8 = pnand %p1320_p6, %p1314_p7 }
  0x44   : > { %1324 = shalt.err (!%p1321_p8)
}
  0x45   : > { %s1325_s13 = scalar_lea.vmem %s1656_s3, 128  ;;  %s1491_s17 = smov [#allocation2]  }
  0x46   : > { %p1326_p12 = scmp.ne.s32.totalorder %s1656_s3, %s1325_s13  ;;  %s1330_s22 = sshll.u32 %s1491_s17, 4  ;;  %s1331_s22 = int_to_ptr.vmem [resolvable:$false] %s1330_s22 }
  0x47   : > { %s1332_s8 = scalar_lea.vmem %s1331_s22, 256  ;;  %p1333_p5 = scmp.lt.s32.totalorder %s1656_s3, %s1331_s22 }
  0x48   : > { %p1328_p11 = pnand %p1326_p12, %p1312_p3  ;;  %p1334_p9 = scmp.lt.s32.totalorder %s1332_s8, %s1325_s13 }
  0x4a   : > { %p1329_p0 = pneg %p1328_p11  ;;  %p1335_p1 = por %p1334_p9, %p1333_p5 }
  0x4c   : > { %p1336_p2 = pnand %p1335_p1, %p1329_p0 }
  0x4e   : > { %1339 = shalt.err (!%p1336_p2)
}
  0x4f   : > { %1202 = dma.hbm_to_vmem [thread:$0]  (!%p1660_p13), %s1654_s18, 128, %s1656_s3, %s277_s19  }
  0x50   : > { %p1952_p7 = scmp.ne.s32.totalorder %s1944_s11, 0 }
  0x51   : > { %s1692_s15 = sand.u32 (!%p1952_p7), 1, %s1470_s25   ;;  %p1953_p3 = scmp.ne.s32.totalorder (!%p1952_p7), %s1942_s9, 0 }
  0x52   : > { %297 = sbr.rel (%p1952_p7) target bundleno = 921 (0x399), region = 40  ;;  %s1141_s12 = sshll.u32 (!%p1952_p7), %s1692_s15, 3 }
  0x53   : > { %s300_s20 = scalar_lea.sflag (!%p1952_p7), [#allocation3], %s1692_s15  ;;  %s303_s16 = scalar_lea.vmem (!%p1952_p7), [#allocation2], %s1141_s12 }
  0x59   : > { %1449 = dma.done.wait (%p1953_p3), %s300_s20, 128  }
  0x5a   : > { %1451 = vsyncadd (%p1953_p3), %s300_s20, 4294967168  ;;  %p1954_p4 = scmp.eq.s32.totalorder %s1576_s30, 0 }
  0x5c   : > { %1453 = dma.done.wait (%p1954_p4), [#allocation6], 256   ;;  %p1955_p13 = pmov %p1954_p4 }
  0x5d   : > { %vm352_vm0 = vcmask 261120   ;;  %v349_v0 = vld [vmem:[%s303_s16] sm:$0xff]  ;;  %v1278_v7 = vld [vmem:[#allocation5] sm:$0xff]   ;;  %v1492_v8 = vmov 0.0   ;;  %vm1493_vm1 = vmmov 0   ;;  %v1279_v9 = vld [vmem:[#allocation5 + $0x8] sm:$0xff]   ;;  %v463_v28 = vlaneseq }
  0x5e   : > { %1455 = vsyncadd (%p1955_p13), [#allocation6], 4294967040  ;;  %v353_v1 = vsel %vm352_vm0, %v349_v0, 0.0  ;;  %1175 = vmatprep.subr.bf16.mxu0 %v1492_v8  ;;  %1179 = vmatprep.mubr.msk.bf16.mxu0 %vm1493_vm1, %v1492_v8  ;;  %v1146_v14 = vld [vmem:[%s1929_s1] ss:$0 sm:$0xff]  ;;  %s1494_s13 = smov 104  }
  0x5f   : > { %354 = vadd.xlane.f32.xlu0 %v353_v1  ;;  %1176 = vmatpush3.bf16.msra.mxu0 %v1278_v7  ;;  %v1147_v16 = vld [vmem:[%s1930_s2] ss:$0 sm:$0xff]  ;;  %s1495_s17 = smov 120   ;;  %s1496_s22 = smov 112   ;;  %v1499_v26 = vmov 1983009808  }
  0x60   : > { %1177 = vmatprep.subr.bf16.mxu0 %v1492_v8  ;;  %v1148_v20 = vld [vmem:[%s1932_s4] ss:$0 sm:$0xff]  ;;  %s1497_s8 = smov 96   ;;  %s1498_s12 = smov 64   ;;  %v461_v27 = vunpack.c.l.s4 %v1499_v26  ;;  %v1500_v29 = vmov 1934713408  }
  0x61   : > { %v493_v30 = vunpack.c.l.s4 %v1500_v29  ;;  %v464_v32 = vshrl.u32 %v463_v28, 7  ;;  %s1745_s20 = sshll.u32 %s1692_s15, 4  ;;  %vm598_vm2 = vcmask 60416   ;;  %s1748_s16 = sshll.u32 %s1478_s27, 8 }
  0x62   : > { %v462_v31 = vunpack.c.0.s8 %v461_v27  ;;  %s333_s3 = scalar_lea.vmem [#allocation7], %s1745_s20  ;;  %s1759_s18 = scalar_lea.hbm %s1933_s5, %s1748_s16 }
  0x63   : > { %1178 = vmatpush3.bf16.msra.mxu0 %v1279_v9  ;;  %v494_v35 = vunpack.c.0.s8 %v493_v30  ;;  %s940_s14 = sshll.u32 %s333_s3, 4  ;;  %s916_s27 = scalar_lea.sflag [#allocation4], %s1692_s15  ;;  %s1761_s14 = int_to_ptr.vmem [resolvable:$true] %s940_s14 }
  0x64   : > { %v1719_v36 = vsub.s32 %v462_v31, %v464_v32  ;;  %s1340_s19 = scalar_lea.vmem %s1761_s14, 256 }
  0x65   : > { %v1723_v42 = vsub.s32 %v494_v35, %v464_v32  ;;  %p1341_p6 = scmp.ne.s32.totalorder %s1761_s14, %s1340_s19 }
  0x67   : > { %p1342_p8 = pnand %p1341_p6, %p1639_p10 }
  0x69   : > { %p1343_p12 = pneg %p1342_p8 }
  0xec   : > { %v355_v2 = vpop.xlane.xlu0 %354 }
  0xed   : > { %v357_v3 = vmul.f32 0.03125, %v355_v2 }
  0xef   : > { %v358_v4 = vsub.f32 %v349_v0, %v357_v3 }
  0xf1   : > { %v359_v5 = vmul.f32 %v358_v4, %v358_v4 }
  0xf3   : > { %v360_v6 = vsel %vm352_vm0, %v359_v5, 0.0 }
  0xf4   : > { %361 = vadd.xlane.f32.xlu0 %v360_v6 }
 0x181   : > { %v362_v10 = vpop.xlane.xlu0 %361 }
 0x182   : > { %v363_v11 = vmul.f32 0.03125, %v362_v10 }
 0x184   : > { %v364_v12 = vadd.f32 1e-05, %v363_v11 }
 0x186   : > { %1280 = vrsqrt.f32 %v364_v12 }
 0x190   : > { %v1281_v13 = vpop.eup %1280 }
 0x191   : > { %v366_v15 = vmul.f32 %v1281_v13, %v358_v4 }
 0x193   : > { %v373_v17 = vmul.f32 %v1146_v14, %v366_v15 }
 0x195   : > { %v380_v18 = vadd.f32 %v1147_v16, %v373_v17 }
 0x197   : > { %v381_v19 = vpack.c.bf16 %v380_v18, %v380_v18 }
 0x199   : > { %1180 = vmatmul.mubr.msk.bf16.vlgmr.msra.gmra.mrb[0].mxu0 %vm352_vm0, %v381_v19 }
 0x26c   : > { %v442_v21 = vpop.f32.mrb[0].mxu0 }
 0x26d   : > { %v443_v22 = vadd.f32 %v1148_v20, %v442_v21  ;;  %v1181_v23 = vpop.f32.mrb[1].mxu0 }
 0x26e   : > { %v445_v24 = vpop.f32.mrb[2].mxu0 }
 0x26f   : > { %455 = vrot.lane.b32.xlu0 %v443_v22, %s1494_s13  ;;  %449 = vrot.lane.b32.xlu1 %v443_v22, %s1495_s17  ;;  %v1182_v25 = vpop.f32.mrb[3].mxu0  ;;  %s1501_s13 = smov [#allocation7]  }
 0x270   : > { %s1344_s17 = sshll.u32 %s1501_s13, 4  ;;  %s1345_s17 = int_to_ptr.vmem [resolvable:$false] %s1344_s17 }
 0x271   : > { %p1347_p11 = scmp.lt.s32.totalorder %s1761_s14, %s1345_s17 }
 0x273   : > { %452 = vrot.lane.b32.xlu1 %v443_v22, %s1496_s22  ;;  %s1346_s22 = scalar_lea.vmem %s1345_s17, 512 }
 0x274   : > { %p1348_p0 = scmp.lt.s32.totalorder %s1346_s22, %s1340_s19 }
 0x276   : > { %p1349_p5 = por %p1348_p0, %p1347_p11 }
 0x277   : > { %603 = vrot.lane.b32.xlu1 %v443_v22, %s1497_s8 }
 0x278   : > { %p1350_p9 = pnand %p1349_p5, %p1343_p12 }
 0x27b   : > { %759 = vrot.lane.b32.xlu1 %v443_v22, %s1498_s12 }
 0x2e1   : > { %v456_v33 = vpop.permute.xlu0 %455  ;;  %v450_v34 = vpop.permute.xlu1 %449 }
 0x2e2   : > { %605 = vrot.lane.b32.xlu1 %v450_v34, %s1497_s8  ;;  %v474_v37 = vcombine.low %v450_v34, %v456_v33  ;;  %v475_v38 = vcombine.high %v450_v34, %v456_v33 }
 0x2e4   : > { %v482_v43 = vrot.slane %v474_v37, %v1719_v36  ;;  %v489_v44 = vrot.slane %v475_v38, %v1719_v36 }
 0x2e5   : > { %v453_v39 = vpop.permute.xlu1 %452 }
 0x2e6   : > { %v458_v40 = vcombine.low %v443_v22, %v453_v39  ;;  %v459_v41 = vcombine.high %v443_v22, %v453_v39  ;;  %763 = vrot.lane.b32.xlu0 %v453_v39, %s1498_s12  ;;  %607 = vrot.lane.b32.xlu1 %v453_v39, %s1497_s8 }
 0x2e8   : > { %v466_v45 = vrot.slane %v458_v40, %v1719_v36  ;;  %v473_v46 = vrot.slane %v459_v41, %v1719_v36 }
 0x2ea   : > { %v490_v47 = vcombine.low %v466_v45, %v482_v43  ;;  %v491_v48 = vcombine.high %v466_v45, %v482_v43  ;;  %v506_v49 = vcombine.low %v473_v46, %v489_v44  ;;  %v507_v50 = vcombine.high %v473_v46, %v489_v44  ;;  %609 = vrot.lane.b32.xlu1 %v456_v33, %s1497_s8 }
 0x2ec   : > { %v498_v51 = vrot.slane %v490_v47, %v1723_v42  ;;  %v505_v52 = vrot.slane %v491_v48, %v1723_v42  ;;  %v514_v53 = vrot.slane %v506_v49, %v1723_v42  ;;  %v521_v54 = vrot.slane %v507_v50, %v1723_v42 }
 0x2ee   : > { %v526_v55 = vcombine.low %v498_v51, %v505_v52  ;;  %v1152_v56 = vcombine.high %v498_v51, %v505_v52  ;;  %v542_v57 = vcombine.low %v514_v53, %v521_v54  ;;  %v1153_v58 = vcombine.high %v514_v53, %v521_v54  ;;  %761 = vrot.lane.b32.xlu1 %v450_v34, %s1498_s12 }
 0x2f0   : > { %v533_v59 = vrot.slane %v526_v55, %v1719_v36  ;;  %v541_v60 = vrot.slane %v1152_v56, %v1719_v36  ;;  %v549_v61 = vrot.slane %v542_v57, %v1719_v36  ;;  %v557_v62 = vrot.slane %v1153_v58, %v1719_v36 }
 0x2f2   : > { %v558_v63 = vcombine.low %v533_v59, %v541_v60  ;;  %v559_v0 = vcombine.high %v533_v59, %v541_v60  ;;  %v574_v1 = vcombine.low %v549_v61, %v557_v62  ;;  %v575_v2 = vcombine.high %v549_v61, %v557_v62  ;;  %765 = vrot.lane.b32.xlu1 %v456_v33, %s1498_s12 }
 0x2f4   : > { %v566_v3 = vrot.slane %v558_v63, %v1723_v42  ;;  %v573_v4 = vrot.slane %v559_v0, %v1723_v42  ;;  %v582_v5 = vrot.slane %v574_v1, %v1723_v42  ;;  %v589_v6 = vrot.slane %v575_v2, %v1723_v42 }
 0x2f6   : > { %v590_v7 = vcombine.low %v566_v3, %v582_v5  ;;  %v591_v8 = vcombine.high %v566_v3, %v582_v5  ;;  %v592_v9 = vcombine.low %v573_v4, %v589_v6  ;;  %v593_v10 = vcombine.high %v573_v4, %v589_v6 }
 0x2f8   : > { %v594_v11 = vpack.c.bf16 %v590_v7, %v590_v7  ;;  %v595_v12 = vpack.c.bf16 %v591_v8, %v591_v8  ;;  %v596_v13 = vpack.c.bf16 %v592_v9, %v592_v9  ;;  %v597_v14 = vpack.c.bf16 %v593_v10, %v593_v10 }
 0x2fa   : > { %599 = vst.msk [vmem:[%s333_s3] sm:$0xf] %vm598_vm2, %v594_v11  ;;  %600 = vst.msk [vmem:[%s333_s3 + $0x4] sm:$0xf] %vm598_vm2, %v595_v12 }
 0x2fb   : > { %601 = vst.msk [vmem:[%s333_s3 + $0x8] sm:$0xf] %vm598_vm2, %v596_v13  ;;  %602 = vst.msk [vmem:[%s333_s3 + $0xc] sm:$0xf] %vm598_vm2, %v597_v14 }
 0x2fc   : > { %1353 = shalt.err (!%p1350_p9)
}
 0x2fd   : > { %s1354_s8 = scalar_lea.hbm %s1759_s18, 256  ;;  %s1358_s11 = scalar_lea.hbm %s1933_s5, 512 }
 0x2fe   : > { %p1355_p1 = scmp.ne.s32.totalorder %s1759_s18, %s1354_s8  ;;  %p1359_p3 = scmp.lt.u32.totalorder %s1759_s18, %s1933_s5 }
 0x2ff   : > { %p1360_p4 = scmp.lt.u32.totalorder %s1358_s11, %s1354_s8  ;;  %p1362_p6 = scmp.lt.u32.totalorder %s1354_s8, %s1759_s18 }
 0x300   : > { %p1356_p2 = pnand %p1355_p1, %p1639_p10 }
 0x301   : > { %p1361_p13 = por %p1360_p4, %p1359_p3 }
 0x302   : > { %p1357_p7 = pneg %p1356_p2 }
 0x303   : > { %p1363_p8 = por %p1362_p6, %p1361_p13 }
 0x305   : > { %p1364_p12 = pnand %p1363_p8, %p1357_p7 }
 0x307   : > { %1367 = shalt.err (!%p1364_p12)
}
 0x308   : > { %s1502_s19 = smov 4   ;;  %v604_v15 = vpop.permute.xlu1 %603  ;;  %s920_s15 = sand.u32 1, %s1576_s30  }
 0x309   : > { %1189 = dma.vmem_to_hbm [thread:$0]  (%p1639_p10), %s1761_s14, 256, %s1759_s18, %s916_s27, %s1498_s12, %s1498_s12, %s1502_s19  }
 0x30a   : > { %s340_s18 = scalar_lea.vmem [#allocation8], %s1745_s20  ;;  %s1820_s8 = scalar_lea.hbm %s1934_s6, %s1748_s16 }
 0x30b   : > { %s957_s14 = sshll.u32 %s340_s18, 4  ;;  %s1834_s3 = scalar_lea.sflag [#allocation9], %s920_s15  ;;  %s1822_s14 = int_to_ptr.vmem [resolvable:$true] %s957_s14 }
 0x30c   : > { %v760_v16 = vpop.permute.xlu1 %759  ;;  %s1368_s9 = scalar_lea.vmem %s1822_s14, 256  ;;  %s1503_s11 = smov [#allocation8]  }
 0x30d   : > { %p1369_p11 = scmp.ne.s32.totalorder %s1822_s14, %s1368_s9  ;;  %s1372_s13 = sshll.u32 %s1503_s11, 4  ;;  %s1373_s13 = int_to_ptr.vmem [resolvable:$false] %s1372_s13 }
 0x30e   : > { %s1374_s17 = scalar_lea.vmem %s1373_s13, 512  ;;  %p1375_p9 = scmp.lt.s32.totalorder %s1822_s14, %s1373_s13 }
 0x30f   : > { %p1370_p0 = pnand %p1369_p11, %p1639_p10  ;;  %p1376_p1 = scmp.lt.s32.totalorder %s1374_s17, %s1368_s9 }
 0x311   : > { %p1371_p5 = pneg %p1370_p0  ;;  %p1377_p2 = por %p1376_p1, %p1375_p9 }
 0x313   : > { %p1378_p7 = pnand %p1377_p2, %p1371_p5 }
 0x354   : > { %v606_v17 = vpop.permute.xlu1 %605 }
 0x358   : > { %v608_v18 = vpop.permute.xlu1 %607  ;;  %v764_v29 = vpop.permute.xlu0 %763 }
 0x359   : > { %v615_v19 = vcombine.low %v604_v15, %v608_v18  ;;  %v616_v20 = vcombine.high %v604_v15, %v608_v18  ;;  %v771_v39 = vcombine.low %v760_v16, %v764_v29  ;;  %v772_v40 = vcombine.high %v760_v16, %v764_v29 }
 0x35b   : > { %v623_v24 = vrot.slane %v615_v19, %v1719_v36  ;;  %v630_v25 = vrot.slane %v616_v20, %v1719_v36  ;;  %v779_v53 = vrot.slane %v771_v39, %v1719_v36  ;;  %v786_v54 = vrot.slane %v772_v40, %v1719_v36 }
 0x35c   : > { %v610_v21 = vpop.permute.xlu1 %609 }
 0x35d   : > { %v631_v22 = vcombine.low %v606_v17, %v610_v21  ;;  %v632_v23 = vcombine.high %v606_v17, %v610_v21 }
 0x35f   : > { %v639_v26 = vrot.slane %v631_v22, %v1719_v36  ;;  %v646_v27 = vrot.slane %v632_v23, %v1719_v36 }
 0x360   : > { %v762_v28 = vpop.permute.xlu1 %761 }
 0x361   : > { %v647_v30 = vcombine.low %v623_v24, %v639_v26  ;;  %v648_v31 = vcombine.high %v623_v24, %v639_v26  ;;  %v663_v32 = vcombine.low %v630_v25, %v646_v27  ;;  %v664_v33 = vcombine.high %v630_v25, %v646_v27 }
 0x363   : > { %v655_v34 = vrot.slane %v647_v30, %v1723_v42  ;;  %v662_v35 = vrot.slane %v648_v31, %v1723_v42  ;;  %v671_v37 = vrot.slane %v663_v32, %v1723_v42  ;;  %v678_v38 = vrot.slane %v664_v33, %v1723_v42 }
 0x364   : > { %v766_v41 = vpop.permute.xlu1 %765 }
 0x365   : > { %v683_v43 = vcombine.low %v655_v34, %v662_v35  ;;  %v1154_v44 = vcombine.high %v655_v34, %v662_v35  ;;  %v699_v45 = vcombine.low %v671_v37, %v678_v38  ;;  %v1155_v46 = vcombine.high %v671_v37, %v678_v38 }
 0x366   : > { %v787_v47 = vcombine.low %v762_v28, %v766_v41  ;;  %v788_v48 = vcombine.high %v762_v28, %v766_v41 }
 0x367   : > { %v690_v49 = vrot.slane %v683_v43, %v1719_v36  ;;  %v698_v50 = vrot.slane %v1154_v44, %v1719_v36  ;;  %v706_v51 = vrot.slane %v699_v45, %v1719_v36  ;;  %v714_v52 = vrot.slane %v1155_v46, %v1719_v36 }
 0x368   : > { %v795_v55 = vrot.slane %v787_v47, %v1719_v36  ;;  %v802_v56 = vrot.slane %v788_v48, %v1719_v36 }
 0x369   : > { %v715_v57 = vcombine.low %v690_v49, %v698_v50  ;;  %v716_v58 = vcombine.high %v690_v49, %v698_v50  ;;  %v731_v59 = vcombine.low %v706_v51, %v714_v52  ;;  %v732_v60 = vcombine.high %v706_v51, %v714_v52 }
 0x36a   : > { %v803_v61 = vcombine.low %v779_v53, %v795_v55  ;;  %v804_v62 = vcombine.high %v779_v53, %v795_v55  ;;  %v819_v63 = vcombine.low %v786_v54, %v802_v56  ;;  %v820_v0 = vcombine.high %v786_v54, %v802_v56 }
 0x36b   : > { %v723_v1 = vrot.slane %v715_v57, %v1723_v42  ;;  %v730_v2 = vrot.slane %v716_v58, %v1723_v42  ;;  %v739_v3 = vrot.slane %v731_v59, %v1723_v42  ;;  %v746_v4 = vrot.slane %v732_v60, %v1723_v42 }
 0x36c   : > { %v811_v5 = vrot.slane %v803_v61, %v1723_v42  ;;  %v818_v6 = vrot.slane %v804_v62, %v1723_v42  ;;  %v827_v7 = vrot.slane %v819_v63, %v1723_v42  ;;  %v834_v8 = vrot.slane %v820_v0, %v1723_v42 }
 0x36d   : > { %v747_v9 = vcombine.low %v723_v1, %v739_v3  ;;  %v748_v10 = vcombine.high %v723_v1, %v739_v3  ;;  %v749_v11 = vcombine.low %v730_v2, %v746_v4  ;;  %v750_v12 = vcombine.high %v730_v2, %v746_v4 }
 0x36e   : > { %v839_v13 = vcombine.low %v811_v5, %v818_v6  ;;  %v1156_v14 = vcombine.high %v811_v5, %v818_v6  ;;  %v855_v15 = vcombine.low %v827_v7, %v834_v8  ;;  %v1157_v16 = vcombine.high %v827_v7, %v834_v8 }
 0x36f   : > { %v751_v17 = vpack.c.bf16 %v747_v9, %v747_v9  ;;  %v752_v18 = vpack.c.bf16 %v748_v10, %v748_v10  ;;  %v753_v19 = vpack.c.bf16 %v749_v11, %v749_v11  ;;  %v754_v20 = vpack.c.bf16 %v750_v12, %v750_v12 }
 0x370   : > { %v846_v21 = vrot.slane %v839_v13, %v1719_v36  ;;  %v854_v22 = vrot.slane %v1156_v14, %v1719_v36  ;;  %v862_v23 = vrot.slane %v855_v15, %v1719_v36  ;;  %v870_v24 = vrot.slane %v1157_v16, %v1719_v36 }
 0x371   : > { %755 = vst.msk [vmem:[%s340_s18] sm:$0xf] %vm598_vm2, %v751_v17  ;;  %756 = vst.msk [vmem:[%s340_s18 + $0x4] sm:$0xf] %vm598_vm2, %v752_v18 }
 0x372   : > { %757 = vst.msk [vmem:[%s340_s18 + $0x8] sm:$0xf] %vm598_vm2, %v753_v19  ;;  %758 = vst.msk [vmem:[%s340_s18 + $0xc] sm:$0xf] %vm598_vm2, %v754_v20  ;;  %v871_v25 = vcombine.low %v846_v21, %v854_v22  ;;  %v872_v26 = vcombine.high %v846_v21, %v854_v22  ;;  %v887_v27 = vcombine.low %v862_v23, %v870_v24 }
 0x373   : > { %v888_v28 = vcombine.high %v862_v23, %v870_v24 }
 0x374   : > { %1381 = shalt.err (!%p1378_p7)
}
 0x375   : > { %s1382_s30 = scalar_lea.hbm %s1820_s8, 256  ;;  %s1386_s27 = scalar_lea.hbm %s1934_s6, 512 }
 0x376   : > { %p1383_p3 = scmp.ne.s32.totalorder %s1820_s8, %s1382_s30  ;;  %p1387_p6 = scmp.lt.u32.totalorder %s1820_s8, %s1934_s6 }
 0x377   : > { %p1388_p8 = scmp.lt.u32.totalorder %s1386_s27, %s1382_s30  ;;  %p1390_p11 = scmp.lt.u32.totalorder %s1382_s30, %s1820_s8 }
 0x378   : > { %p1384_p4 = pnand %p1383_p3, %p1639_p10 }
 0x379   : > { %p1389_p12 = por %p1388_p8, %p1387_p6 }
 0x37a   : > { %p1385_p13 = pneg %p1384_p4 }
 0x37b   : > { %p1391_p0 = por %p1390_p11, %p1389_p12 }
 0x37d   : > { %p1392_p5 = pnand %p1391_p0, %p1385_p13 }
 0x37f   : > { %1395 = shalt.err (!%p1392_p5)
}
 0x380   : > { %1190 = dma.vmem_to_hbm [thread:$0]  (%p1639_p10), %s1822_s14, 256, %s1820_s8, %s1834_s3, %s1498_s12, %s1498_s12, %s1502_s19   ;;  %v879_v36 = vrot.slane %v871_v25, %v1723_v42  ;;  %v886_v29 = vrot.slane %v872_v26, %v1723_v42  ;;  %v895_v30 = vrot.slane %v887_v27, %v1723_v42  ;;  %v902_v31 = vrot.slane %v888_v28, %v1723_v42 }
 0x381   : > { %s347_s9 = scalar_lea.vmem [#allocation10], %s1745_s20  ;;  %s1870_s17 = scalar_lea.hbm %s1935_s7, %s1748_s16 }
 0x382   : > { %s974_s13 = sshll.u32 %s347_s9, 4  ;;  %v903_v32 = vcombine.low %v879_v36, %v895_v30  ;;  %v904_v33 = vcombine.high %v879_v36, %v895_v30  ;;  %v905_v34 = vcombine.low %v886_v29, %v902_v31  ;;  %v906_v35 = vcombine.high %v886_v29, %v902_v31  ;;  %s1504_s16 = smov [#allocation10]   ;;  %s1872_s13 = int_to_ptr.vmem [resolvable:$true] %s974_s13 }
 0x383   : > { %s1396_s20 = scalar_lea.vmem %s1872_s13, 256  ;;  %s1400_s30 = sshll.u32 %s1504_s16, 4  ;;  %s1401_s30 = int_to_ptr.vmem [resolvable:$false] %s1400_s30 }
 0x384   : > { %v907_v37 = vpack.c.bf16 %v903_v32, %v903_v32  ;;  %v908_v38 = vpack.c.bf16 %v904_v33, %v904_v33  ;;  %v909_v39 = vpack.c.bf16 %v905_v34, %v905_v34  ;;  %v910_v40 = vpack.c.bf16 %v906_v35, %v906_v35  ;;  %p1397_p9 = scmp.ne.s32.totalorder %s1872_s13, %s1396_s20  ;;  %s1402_s15 = scalar_lea.vmem %s1401_s30, 512 }
 0x385   : > { %p1403_p7 = scmp.lt.s32.totalorder %s1872_s13, %s1401_s30  ;;  %p1404_p3 = scmp.lt.s32.totalorder %s1402_s15, %s1396_s20 }
 0x386   : > { %911 = vst.msk [vmem:[%s347_s9] sm:$0xf] %vm598_vm2, %v907_v37  ;;  %912 = vst.msk [vmem:[%s347_s9 + $0x4] sm:$0xf] %vm598_vm2, %v908_v38  ;;  %p1398_p1 = pnand %p1397_p9, %p1639_p10 }
 0x387   : > { %913 = vst.msk [vmem:[%s347_s9 + $0x8] sm:$0xf] %vm598_vm2, %v909_v39  ;;  %914 = vst.msk [vmem:[%s347_s9 + $0xc] sm:$0xf] %vm598_vm2, %v910_v40  ;;  %p1405_p4 = por %p1404_p3, %p1403_p7 }
 0x388   : > { %p1399_p2 = pneg %p1398_p1 }
 0x38a   : > { %p1406_p13 = pnand %p1405_p4, %p1399_p2 }
 0x38c   : > { %1409 = shalt.err (!%p1406_p13)
}
 0x38d   : > { %s1410_s18 = scalar_lea.hbm %s1870_s17, 256  ;;  %s1414_s11 = scalar_lea.hbm %s1935_s7, 512 }
 0x38e   : > { %p1411_p6 = scmp.ne.s32.totalorder %s1870_s17, %s1410_s18  ;;  %p1415_p11 = scmp.lt.u32.totalorder %s1870_s17, %s1935_s7 }
 0x38f   : > { %p1416_p0 = scmp.lt.u32.totalorder %s1414_s11, %s1410_s18  ;;  %p1418_p9 = scmp.lt.u32.totalorder %s1410_s18, %s1870_s17 }
 0x390   : > { %p1412_p8 = pnand %p1411_p6, %p1639_p10 }
 0x391   : > { %p1417_p5 = por %p1416_p0, %p1415_p11 }
 0x392   : > { %p1413_p12 = pneg %p1412_p8 }
 0x393   : > { %p1419_p1 = por %p1418_p9, %p1417_p5 }
 0x395   : > { %p1420_p2 = pnand %p1419_p1, %p1413_p12 }
 0x397   : > { %1423 = shalt.err (!%p1420_p2)
}
 0x398   : > { %1191 = dma.vmem_to_hbm [thread:$0]  (%p1639_p10), %s1872_s13, 256, %s1870_s17, %s1834_s3, %s1498_s12, %s1498_s12, %s1502_s19  }
 0x399 PF: > { %s989_s8 = sand.u32 1, %s1466_s24   ;;  %p1956_p7 = scmp.ne.s32.totalorder %s1943_s10, 0 }
 0x39a   : > { %p1957_p3 = scmp.ge.s32.totalorder %s1486_s29, 2  ;;  %s990_s20 = scalar_lea.sflag [#allocation4], %s989_s8 }
 0x39c   : > { %p1204_p4 = pnand %p1957_p3, %p1956_p7 }
 0x39e   : > { %1457 = dma.done.wait (!%p1204_p4), %s990_s20, 256  }
 0x39f   : > { %1459 = vsyncadd (!%p1204_p4), %s990_s20, 4294967040  ;;  %s1958_s21 = sadd.s32 4294967294, %s1486_s29  }
 0x3a0   : > { %s998_s16 = sand.u32 1, %s1958_s21  }
 0x3a1   : > { %s999_s30 = scalar_lea.sflag [#allocation9], %s998_s16 }
 0x3a2   : > { %1461 = dma.done.wait (!%p1204_p4), %s999_s30, 512  }
 0x3a3   : > { %1463 = vsyncadd (!%p1204_p4), %s999_s30, 4294966784  ;;  %s28_s29 = sadd.s32 1, %s1486_s29   ;;  %s1959_s12 = sld [smem:[#allocation15_spill]] }
 0x3a4   : > { %p25_p10 = scmp.ge.s32.totalorder %s28_s29, 4   ;;  %s1960_s24 = smov %s1470_s25 }
 0x3a5   : > { %s1961_s25 = smov %s1474_s26  ;;  %s1962_s26 = smov %s1648_s23 }
 0x3a6   : > { %s1963_s27 = smov %s1482_s28  ;;  %27 = sbr.rel (!%p25_p10) target bundleno = 11 (0xb), region = 121 }
 0x3a9   : > { %s1964_s28 = smov %s1959_s12 }
 0x3ad   :  { %1013 = vsyncpa [#allocation3], 1 }
 0x3ae   :  { %1015 = vsyncpa [#allocation3 + $0x1], 1 }
 0x3af   :  { %1016 = vsyncpa [#allocation6], 1 }
 0x3b0   :  { %1017 = vsyncpa [#allocation4], 1 }
 0x3b1   :  { %1019 = vsyncpa [#allocation4 + $0x1], 1 }
 0x3b2   :  { %1020 = vsyncpa [#allocation9], 1 }
 0x3b3   :  { %1022 = vsyncpa [#allocation9 + $0x1], 1 }

</bundles_post_ra>
